<compile_context>
chip_gen: v6e
topology: v6e:2x2x1
jax: 0.10.0
libtpu: 0.0.40
codegen_flags: <defaults>
</compile_context>

<pallas_src>
import jax
import jax.numpy as jnp
from jax.experimental import pallas as pl
from jax.experimental.pallas import tpu as pltpu

_LANE = 128        # lane width  (last-dim vreg tiling)
_SUBLANE = 8       # sublane width (second-to-last-dim vreg tiling, fp32)

_DMA_TARGET_BYTES = 2 << 20          # aim for >= ~2 MiB of HBM traffic / step
_BLOCK_VMEM_BUDGET = 24 << 20        # x/out double-buffered blocks budget
_MAX_BLOCK_M = 4096                  # row-tile ceiling
_W_SINGLE_BUFFER_BYTES = 256 << 10   # single-buffer the resident weight above this


def _round_up(n, m):
    return ((n + m - 1) // m) * m


def _cdiv(a, b):
    return -(-a // b)


def _linear_kernel(x_ref, w_ref, b_ref, o_ref):
    # x_ref: (TM, F)   w_ref: (F, O)   b_ref: (1, O) fp32   o_ref: (TM, O)
    # Cast activations to the weight's compute dtype (bf16 by default) in-vreg;
    # MXU accumulates in fp32, bias is added in fp32, then cast to out dtype.
    x = x_ref[...].astype(w_ref.dtype)
    acc = jnp.dot(x, w_ref[...], preferred_element_type=jnp.float32)
    o_ref[...] = (acc + b_ref[...]).astype(o_ref.dtype)


def prepare_pre_encoder_params(weight, bias, compute_dtype=jnp.bfloat16):
    """One-time parameter prep (hoisted out of the forward path).

    Args:
      weight: (O, F) PyTorch nn.Linear weight layout.
      bias:   (O,)
      compute_dtype: dtype fed to the MXU (default bf16; accumulation stays fp32).
    Returns:
      w_t: (F, O) pre-transposed weight in compute_dtype (no HBM padding).
      b2d: (1, O) fp32 bias (added to the fp32 accumulator).
    """
    O, F = weight.shape
    w_t = jnp.asarray(weight, jnp.float32).T.astype(compute_dtype)
    b2d = jnp.asarray(bias, jnp.float32).reshape(1, O)
    return w_t, b2d


def pre_encoder_forward(x, w_t, b2d, *, out_dtype=None, block_m_max=_MAX_BLOCK_M):
    """PreEncoder forward pass: (B, T, F) -> (B, T, O)."""
    B, T, F = x.shape
    M = B * T
    Fw, O = w_t.shape
    assert Fw == F, f"weight expects F={Fw}, got x with F={F}"
    if out_dtype is None:
        out_dtype = x.dtype

    x_it = jnp.dtype(x.dtype).itemsize
    o_it = jnp.dtype(out_dtype).itemsize
    w_it = jnp.dtype(w_t.dtype).itemsize

    # ---- adaptive row tile -------------------------------------------------
    # Big enough to hide per-grid-step overhead (>= ~2 MiB HBM traffic/step),
    # capped so double-buffered x/out blocks stay inside the VMEM budget.
    hbm_row = F * x_it + O * o_it
    tm = _round_up(max(1, _cdiv(_DMA_TARGET_BYTES, hbm_row)), _SUBLANE)
    vmem_row = 2 * _round_up(F, _LANE) * x_it + 2 * _round_up(O, _LANE) * o_it
    w_vmem = 2 * _round_up(F, 2 * _SUBLANE) * _round_up(O, _LANE) * w_it
    bias_vmem = 2 * _SUBLANE * _round_up(O, _LANE) * 4
    tm_cap = max(_SUBLANE,
                 ((_BLOCK_VMEM_BUDGET - w_vmem) // vmem_row) // _SUBLANE * _SUBLANE)
    tm = min(tm, tm_cap, block_m_max, _round_up(M, _SUBLANE))

    grid_m = _cdiv(M, tm)
    # v7x megacore: make sure the "parallel" axis has >= 2 tiles whenever M
    # allows, so both TensorCores get work (no-op on single-TC v5e/v6e).
    if grid_m < 2 and M > _SUBLANE:
        tm = _round_up(_cdiv(M, 2), _SUBLANE)
        grid_m = _cdiv(M, tm)

    # Explicit VMEM limit (v5e's scoped default is only 16 MiB); capped at the
    # v7x physical 64 MiB.
    vmem_limit = int(min(64 << 20,
                         max(4 << 20,
                             (tm * vmem_row + w_vmem + bias_vmem) * 3 // 2
                             + (1 << 20))))

    # Free view (no HBM copy): contiguous (B, T, F) -> (M, F).
    x2d = x.reshape(M, F)

    # Resident weight / bias: constant index_map -> fetched once.  Once the
    # weight is big enough to matter, single-buffer it to halve its VMEM cost.
    resident_kwargs = {}
    if F * O * w_it >= _W_SINGLE_BUFFER_BYTES:
        resident_kwargs["pipeline_mode"] = pl.Buffered(buffer_count=1)

    cost = pl.CostEstimate(
        flops=2 * M * F * O,
        transcendentals=0,
        bytes_accessed=M * F * x_it + F * O * w_it + O * 4 + M * O * o_it,
    )

    out2d = pl.pallas_call(
        _linear_kernel,
        out_shape=jax.ShapeDtypeStruct((M, O), out_dtype),
        grid=(grid_m,),
        in_specs=[
            pl.BlockSpec((tm, F), lambda i: (i, 0)),                    # x tile
            pl.BlockSpec((F, O), lambda i: (0, 0), **resident_kwargs),  # W resident
            pl.BlockSpec((1, O), lambda i: (0, 0), **resident_kwargs),  # bias resident
        ],
        out_specs=pl.BlockSpec((tm, O), lambda i: (i, 0)),
        compiler_params=pltpu.CompilerParams(
            dimension_semantics=("parallel",),
            vmem_limit_bytes=vmem_limit),
        cost_estimate=cost,
    )(x2d, w_t, b2d)

    # Free view back to (B, T, O); no padded columns/rows to slice off.
    return out2d.reshape(B, T, O)


def init_pre_encoder_params(key, input_dims, output_dims):
    """Deterministic nn.Linear-style init: U(-1/sqrt(F), 1/sqrt(F))."""
    kw, kb = jax.random.split(key)
    bound = 1.0 / (input_dims ** 0.5)
    weight = jax.random.uniform(
        kw, (output_dims, input_dims), jnp.float32, -bound, bound)
    bias = jax.random.uniform(
        kb, (output_dims,), jnp.float32, -bound, bound)
    return weight, bias


if __name__ == "__main__":
    # Small shapes consistent with the module's forward: x is (B, T, F).
    B, T = 2, 8
    input_dims = 32            # F
    output_dims = 16           # O
    encoder_hidden_dims = 32   # stored by the module but unused in forward

    key = jax.random.PRNGKey(0)
    kx, kp = jax.random.split(key)

    x = jax.random.normal(kx, (B, T, input_dims), dtype=jnp.float32)
    weight, bias = init_pre_encoder_params(kp, input_dims, output_dims)

    # One-time param prep (transpose + bf16 cast), then the forward pass.
    w_t, b2d = prepare_pre_encoder_params(weight, bias)   # bf16 weight, fp32 bias
    out = pre_encoder_forward(x, w_t, b2d)
    out = jax.block_until_ready(out)

    M = B * T
    x2d = x.reshape(M, input_dims)

    # Exact-numerics reference: bf16-rounded inputs, fp32 accumulation
    # (precisely what the kernel computes).
    xb = x2d.astype(jnp.bfloat16).astype(jnp.float32)
    wb = weight.astype(jnp.bfloat16).astype(jnp.float32)
    ref_exact = (xb @ wb.T + bias).reshape(B, T, output_dims)
    # Module-level reference (pure fp32 linear); only differs by bf16 input
    # rounding, hence the looser tolerance.
    ref_f32 = (x2d @ weight.T + bias).reshape(B, T, output_dims)

    assert out.shape == (B, T, output_dims)
    assert out.dtype == x.dtype
    assert jnp.allclose(out, ref_exact, atol=1e-4, rtol=1e-4)
    assert jnp.allclose(out, ref_f32, atol=5e-2, rtol=5e-2)

    print("KERNEL_OK")
</pallas_src>

<mosaic_0001>
module attributes {stable_mosaic.version = 11 : i64} {
  func.func @_linear_kernel(%arg0: i32, %arg1: memref<8x32xf32, #tpu.memory_space<vmem>>, %arg2: memref<32x16xbf16, #tpu.memory_space<vmem>>, %arg3: memref<1x16xf32, #tpu.memory_space<vmem>>, %arg4: memref<8x16xf32, #tpu.memory_space<vmem>>) attributes {dimension_semantics = [#tpu.dimension_semantics<parallel>], iteration_bounds = array<i64: 2>, scalar_prefetch = 0 : i64, scratch_operands = 0 : i64, tpu.core_type = #tpu.core_type<tc>, window_params = [{transform_indices = @transform_0, window_bounds = array<i64: 8, 32>}, {pipeline_mode = #tpu.pipeline_mode<synchronous>, transform_indices = @transform_1, window_bounds = array<i64: 32, 16>}, {pipeline_mode = #tpu.pipeline_mode<synchronous>, transform_indices = @transform_2, window_bounds = array<i64: 1, 16>}, {transform_indices = @transform_3, window_bounds = array<i64: 8, 16>}]} {
    %c0 = arith.constant 0 : index
    %c0_0 = arith.constant 0 : index
    %0 = vector.load %arg1[%c0, %c0_0] : memref<8x32xf32, #tpu.memory_space<vmem>>, vector<8x32xf32>
    %1 = arith.truncf %0 : vector<8x32xf32> to vector<8x32xbf16>
    %c0_1 = arith.constant 0 : index
    %c0_2 = arith.constant 0 : index
    %2 = vector.load %arg2[%c0_1, %c0_2] : memref<32x16xbf16, #tpu.memory_space<vmem>>, vector<32x16xbf16>
    %cst = arith.constant dense<0.000000e+00> : vector<8x16xf32>
    %3 = tpu.matmul %1, %2, %cst {dimension_numbers = #tpu.dot_dimension_numbers<[1], [0], [0], [1], [0, 0, 1, 1], [], []>} : vector<8x32xbf16>, vector<32x16xbf16>, vector<8x16xf32> -> vector<8x16xf32>
    %c0_3 = arith.constant 0 : index
    %c0_4 = arith.constant 0 : index
    %4 = vector.load %arg3[%c0_3, %c0_4] : memref<1x16xf32, #tpu.memory_space<vmem>>, vector<1x16xf32>
    %5 = vector.broadcast %4 : vector<1x16xf32> to vector<8x16xf32>
    %6 = arith.addf %3, %5 : vector<8x16xf32>
    %c0_5 = arith.constant 0 : index
    %c0_6 = arith.constant 0 : index
    %7 = vector.load %arg4[%c0_5, %c0_6] : memref<8x16xf32, #tpu.memory_space<vmem>>, vector<8x16xf32>
    tpu.vector_store %arg4[%c0_5, %c0_6], %6 {strides = array<i32>} : memref<8x16xf32, #tpu.memory_space<vmem>>, vector<8x16xf32>,
    return
  }
  func.func @transform_0(%arg0: i32) -> (i32, i32) {
    %c0_i32 = arith.constant 0 : i32
    %c0_i32_0 = arith.constant 0 : i32
    return %arg0, %c0_i32 : i32, i32
  }
  func.func @transform_1(%arg0: i32) -> (i32, i32) {
    %c0_i32 = arith.constant 0 : i32
    %c0_i32_0 = arith.constant 0 : i32
    %c0_i32_1 = arith.constant 0 : i32
    return %c0_i32, %c0_i32_0 : i32, i32
  }
  func.func @transform_2(%arg0: i32) -> (i32, i32) {
    %c0_i32 = arith.constant 0 : i32
    %c0_i32_0 = arith.constant 0 : i32
    %c0_i32_1 = arith.constant 0 : i32
    return %c0_i32, %c0_i32_0 : i32, i32
  }
  func.func @transform_3(%arg0: i32) -> (i32, i32) {
    %c0_i32 = arith.constant 0 : i32
    %c0_i32_0 = arith.constant 0 : i32
    return %arg0, %c0_i32 : i32, i32
  }
}

</mosaic_0001>

<bundles_post_ra>
// kernel: tpu_custom_call.1
= control target key start
LH: loop header
LB: loop body
LE: loop exit
PB: predicated region body
PF: predicated region fallthrough
CT: control target
= control target key end

     0   :  { %8 = vsyncpa [#allocation3], 0  ;;  %s572_s0 = inlined_call_operand.vmem [shape: f32[16,32], index: 0, kind: input, shape index: {}]   ;;  %s573_s1 = inlined_call_operand.vmem [shape: bf16[32,16], index: 1, kind: input, shape index: {}]   ;;  %s574_s2 = inlined_call_operand.vmem [shape: f32[1,16], index: 2, kind: input, shape index: {}]   ;;  %s575_s3 = inlined_call_operand.hbm [shape: f32[16,16], index: 3, kind: output, shape index: {}]  }
   0x1   :  { %10 = vsyncpa [#allocation3 + $0x1], 0  ;;  %s464_s12 = smov 0   ;;  %s466_s13 = smov 0  }
   0x2   :  { %s468_s14 = smov 0   ;;  %s470_s15 = smov 0  }
   0x3 LB: > { %s485_s16 = sadd.s32 4294967295, %s439_s15   ;;  %s311_s17 = sadd.s32 4294967294, %s439_s15   ;;  %s439_s15 = sphi %s470_s15, %s581_s15   ;;  %s435_s14 = sphi %s468_s14, %s580_s14   ;;  %s431_s13 = sphi %s466_s13, %s579_s13   ;;  %s427_s12 = sphi %s464_s12, %s578_s12  }
   0x4   : > { %s489_s18 = sadd.s32 1, %s439_s15   ;;  %s91_s19 = sadd.s32 1, %s435_s14 }
   0x5   : > { %s88_s20 = ssub.s32 %s439_s15, %s489_s18  ;;  %p101_p0 = scmp.ne.s32.totalorder %s435_s14, %s431_s13 }
   0x6   : > { %p89_p1 = scmp.eq.s32.totalorder %s88_s20, 0  ;;  %p102_p2 = scmp.eq.s32.totalorder %s485_s16, 1 }
   0x7   : > { %p107_p3 = scmp.ne.s32.totalorder %s431_s13, %s427_s12  ;;  %p108_p4 = scmp.eq.s32.totalorder %s311_s17, 1 }
   0x8   : > { %s500_s21 = scalar_select %p89_p1, %s435_s14, %s91_s19  }
   0x9   : > { %p502_p5 = por %p102_p2, %p101_p0  ;;  %p506_p6 = por %p108_p4, %p107_p3 }
   0xa   : > { %p314_p7 = scmp.ge.s32.totalorder %s439_s15, 1  ;;  %p139_p8 = scmp.lt.s32.totalorder %s439_s15, 3 }
   0xc   : > { %p140_p9 = pnand %p314_p7, %p139_p8 }
   0xd   : > { %p162_p10 = scmp.lt.s32.totalorder (!%p140_p9), %s485_s16, 1  ;;  %s159_s6 = sand.u32 (!%p140_p9), 1, %s431_s13  }
   0xe   : > { %143 = sbr.rel (%p140_p9) target bundleno = 237 (0xed), region = 32  ;;  %s315_s7 = sshll.u32 (!%p140_p9), %s159_s6, 3 }
   0xf   : > { %s322_s10 = sshll.u32 (!%p140_p9), %s485_s16, 7  ;;  %s161_s11 = scalar_lea.vmem (!%p140_p9), [#allocation2], %s315_s7 }
  0x10   : > { %s252_s17 = sshll.u32 (!%p140_p9), %s161_s11, 4  ;;  %s531_s24 = scalar_lea.hbm (!%p140_p9), %s575_s3, %s322_s10  ;;  %s533_s17 = int_to_ptr.vmem [resolvable:$true] %s252_s17 }
  0x11   : > { %s239_s25 = scalar_lea.sflag (!%p140_p9), [#allocation3], %s159_s6  ;;  %s443_s26 = smov (!%p140_p9), [#allocation2]  }
  0x12   : > { %s383_s27 = sshll.u32 (!%p140_p9), %s443_s26, 4  ;;  %s384_s27 = int_to_ptr.vmem [resolvable:$false] %s383_s27 }
  0x13   : > { %v377_v0 = vld [vmem:[%s573_s1 + $0x8] sm:$0xff]   ;;  %v441_v1 = vmov 0.0   ;;  %v378_v2 = vld [vmem:[%s573_s1] sm:$0xff]   ;;  %vm442_vm0 = vmmov 0   ;;  %s163_s28 = scalar_select %p162_p10, %s485_s16, 1  ;;  %vm192_vm1 = vcmask 261120  }
  0x14   : > { %328 = vmatprep.subr.bf16.mxu0 %v441_v1  ;;  %332 = vmatprep.mubr.msk.bf16.mxu0 %vm442_vm0, %v441_v1  ;;  %v317_v5 = vld [vmem:[%s574_s2] ss:$0 sm:$0xff]  ;;  %vm236_vm2 = vcmask 130048   ;;  %s379_s16 = scalar_lea.vmem %s533_s17, 128  ;;  %p386_p0 = scmp.lt.s32.totalorder %s533_s17, %s384_s27 }
  0x15   : > { %329 = vmatpush3.bf16.msra.mxu0 %v377_v0  ;;  %s316_s29 = sshll.u32 %s163_s28, 3  ;;  %p380_p11 = scmp.ne.s32.totalorder %s533_s17, %s379_s16 }
  0x16   : > { %330 = vmatprep.subr.bf16.mxu0 %v441_v1  ;;  %s165_s5 = scalar_lea.vmem %s572_s0, %s316_s29  ;;  %s385_s28 = scalar_lea.vmem %s384_s27, 256 }
  0x17   : > { %v167_v3 = vld [vmem:[%s165_s5] sm:$0xff]  ;;  %p381_p12 = pnand %p380_p11, %p502_p5  ;;  %p387_p1 = scmp.lt.s32.totalorder %s385_s28, %s379_s16 }
  0x18   : > { %v168_v4 = vpack.c.bf16 %v167_v3, %v167_v3 }
  0x19   : > { %331 = vmatpush3.bf16.msra.mxu0 %v378_v2  ;;  %p382_p13 = pneg %p381_p12  ;;  %p388_p2 = por %p387_p1, %p386_p0 }
  0x1b   : > { %p389_p3 = pnand %p388_p2, %p382_p13 }
  0x1c   : > { %333 = vmatmul.mubr.msk.bf16.vlgmr.msra.gmra.mxu0 %vm192_vm1, %v168_v4 }
  0xdc   : > { %v230_v6 = vpop.f32.mrf.mxu0 }
  0xdd   : > { %v231_v7 = vadd.f32 %v317_v5, %v230_v6 }
  0xde   : > { %v334_v8 = vpop.f32.mrf.mxu0 }
  0xdf   : > { %237 = vst.msk [vmem:[%s161_s11] sm:$0xff] %vm236_vm2, %v231_v7 }
  0xe0   : > { %v233_v9 = vpop.f32.mrf.mxu0 }
  0xe1   : > { %392 = shalt.err (!%p389_p3)
}
  0xe2   : > { %s393_s29 = scalar_lea.hbm %s531_s24, 128  ;;  %s397_s5 = scalar_lea.hbm %s575_s3, 256 }
  0xe3   : > { %p394_p4 = scmp.ne.s32.totalorder %s531_s24, %s393_s29  ;;  %p398_p9 = scmp.lt.s32.totalorder %s531_s24, %s575_s3 }
  0xe4   : > { %p399_p10 = scmp.lt.s32.totalorder %s397_s5, %s393_s29 }
  0xe5   : > { %p395_p7 = pnand %p394_p4, %p502_p5 }
  0xe6   : > { %p400_p11 = por %p399_p10, %p398_p9 }
  0xe7   : > { %p396_p8 = pneg %p395_p7 }
  0xe9   : > { %p401_p12 = pnand %p400_p11, %p396_p8 }
  0xeb   : > { %404 = shalt.err (!%p401_p12)
}
  0xec   : > { %336 = dma.vmem_to_hbm [thread:$0]  (%p502_p5), %s533_s17, 128, %s531_s24, %s239_s25   ;;  %v335_v10 = vpop.f32.mrf.mxu0 }
  0xed PF: > { %p342_p13 = scmp.ge.s32.totalorder %s439_s15, 2  ;;  %s264_s8 = sand.u32 1, %s427_s12  }
  0xee   : > { %s265_s9 = scalar_lea.sflag [#allocation3], %s264_s8 }
  0xef   : > { %p339_p0 = pnand %p342_p13, %p506_p6 }
  0xf1   : > { %p340_p1 = pneg %p339_p0 }
  0xf3   : > { %422 = dma.done.wait (%p340_p1), %s265_s9, 128  }
  0xf4   : > { %424 = vsyncadd (%p340_p1), %s265_s9, 4294967168  ;;  %p13_p2 = scmp.ge.s32.totalorder %s489_s18, 4   ;;  %s578_s12 = smov %s431_s13 }
  0xf5   : > { %s579_s13 = smov %s435_s14  ;;  %s580_s14 = smov %s500_s21 }
  0xf6   : > { %s581_s15 = smov %s489_s18  ;;  %15 = sbr.rel (!%p13_p2) target bundleno = 3 (0x3), region = 67 }
  0xfb   :  { %270 = vsyncpa [#allocation3], 1 }
  0xfc   :  { %272 = vsyncpa [#allocation3 + $0x1], 1 }

</bundles_post_ra>
